<compile_context>
chip_gen: v7x
topology: tpu7x:2x2x1
jax: 0.10.0
libtpu: 0.0.40
codegen_flags: <defaults>
</compile_context>

<pallas_src>
import functools

import jax
import jax.numpy as jnp
from jax.experimental import pallas as pl
from jax.experimental.pallas import tpu as pltpu

EPS = 1e-5


def _round_up(x, m):
    return (x + m - 1) // m * m


# --------------------------- Pass 1: conv + BN statistics ---------------------------
def conv_stats_kernel(taps_ref, w_ref, gamma_ref, beta_ref,
                      conv_ref, scale_ref, shift_ref,
                      sum_sc, ssq_sc, *, inv_m, eps):
    i = pl.program_id(0)

    @pl.when(i == 0)
    def _init():
        sum_sc[...] = jnp.zeros_like(sum_sc)
        ssq_sc[...] = jnp.zeros_like(ssq_sc)

    # Single K = 9*Cin contraction on the MXU (bf16 operands, f32 accumulation).
    acc = jnp.dot(taps_ref[...], w_ref[...], preferred_element_type=jnp.float32)
    conv_ref[...] = acc

    # One-pass statistics: per-channel sum and sum-of-squares (f32 accumulators).
    sum_sc[...] += jnp.sum(acc, axis=0, keepdims=True)
    ssq_sc[...] += jnp.sum(acc * acc, axis=0, keepdims=True)

    @pl.when(i == pl.num_programs(0) - 1)
    def _finalize():
        mean = sum_sc[...] * inv_m
        var = jnp.maximum(ssq_sc[...] * inv_m - mean * mean, 0.0)
        scale = gamma_ref[...] * jax.lax.rsqrt(var + eps)
        scale_ref[...] = scale
        shift_ref[...] = beta_ref[...] - mean * scale


# ------------------------ Pass 2: fused BN affine + ReLU apply -----------------------
def bn_relu_kernel(conv_ref, scale_ref, shift_ref, o_ref):
    o_ref[...] = jnp.maximum(conv_ref[...] * scale_ref[...] + shift_ref[...], 0.0)


def downsample_pallas(x_nchw, w_oihw, b_conv, gamma, beta, *, max_tile_m=512, eps=EPS):
    N, C, H, W = x_nchw.shape
    Cout = w_oihw.shape[0]
    Ho = (H + 2 - 3) // 2 + 1
    Wo = (W + 2 - 3) // 2 + 1
    M = N * Ho * Wo
    K = 9 * C

    tile_m = min(max_tile_m, _round_up(M, 16))
    m_pad = _round_up(M, tile_m)
    cp = _round_up(Cout, 128)          # lane-dense output channels
    grid = (m_pad // tile_m,)

    # ---- glue (layout only): NCHW -> NHWC (channels on lanes), pad, im2row in bf16 ----
    x = jnp.transpose(x_nchw, (0, 2, 3, 1)).astype(jnp.bfloat16)
    xp = jnp.pad(x, ((0, 0), (1, 1), (1, 1), (0, 0)))
    taps = []
    for kh in range(3):
        for kw in range(3):
            taps.append(xp[:, kh:kh + 2 * Ho:2, kw:kw + 2 * Wo:2, :])   # (N,Ho,Wo,C)
    taps = jnp.concatenate(taps, axis=-1).reshape(M, K)                 # K order (kh,kw,cin)
    if m_pad != M:
        # Zero rows contribute 0 to sum/sumsq (no conv bias); stats divide by the true M.
        taps = jnp.pad(taps, ((0, m_pad - M), (0, 0)))

    # (Cout, Cin, 3, 3) -> (3, 3, Cin, Cout) -> (K, Cout); pad Cout to cp lanes.
    wmat = jnp.transpose(w_oihw, (2, 3, 1, 0)).reshape(K, Cout).astype(jnp.bfloat16)
    wmat = jnp.pad(wmat, ((0, 0), (0, cp - Cout)))
    g2 = jnp.pad(gamma.astype(jnp.float32), (0, cp - Cout)).reshape(1, cp)
    bt2 = jnp.pad(beta.astype(jnp.float32), (0, cp - Cout)).reshape(1, cp)
    # Conv bias is an exact no-op under training-mode BatchNorm (mean subtraction cancels
    # it and variance is shift-invariant) -> dropped with zero numerical change.
    del b_conv

    kern = functools.partial(conv_stats_kernel, inv_m=1.0 / M, eps=eps)
    conv_out, scale, shift = pl.pallas_call(
        kern,
        out_shape=(
            jax.ShapeDtypeStruct((m_pad, cp), jnp.float32),   # conv result (f32)
            jax.ShapeDtypeStruct((1, cp), jnp.float32),       # folded BN scale
            jax.ShapeDtypeStruct((1, cp), jnp.float32),       # folded BN shift
        ),
        grid_spec=pltpu.PrefetchScalarGridSpec(
            num_scalar_prefetch=0,
            grid=grid,
            in_specs=[
                pl.BlockSpec((tile_m, K), lambda i: (i, 0)),  # taps (bf16)
                pl.BlockSpec((K, cp), lambda i: (0, 0)),      # weights (bf16)
                pl.BlockSpec((1, cp), lambda i: (0, 0)),      # gamma (f32)
                pl.BlockSpec((1, cp), lambda i: (0, 0)),      # beta  (f32)
            ],
            out_specs=[
                pl.BlockSpec((tile_m, cp), lambda i: (i, 0)),
                pl.BlockSpec((1, cp), lambda i: (0, 0)),
                pl.BlockSpec((1, cp), lambda i: (0, 0)),
            ],
            scratch_shapes=[pltpu.VMEM((1, cp), jnp.float32),   # per-channel sum
                            pltpu.VMEM((1, cp), jnp.float32)],  # per-channel sum of squares
        ),
        compiler_params=pltpu.CompilerParams(
            dimension_semantics=("arbitrary",)),   # stats accumulate across M tiles
    )(taps, wmat, g2, bt2)

    y = pl.pallas_call(
        bn_relu_kernel,
        out_shape=jax.ShapeDtypeStruct((m_pad, cp), jnp.float32),
        grid_spec=pltpu.PrefetchScalarGridSpec(
            num_scalar_prefetch=0,
            grid=grid,
            in_specs=[
                pl.BlockSpec((tile_m, cp), lambda i: (i, 0)),
                pl.BlockSpec((1, cp), lambda i: (0, 0)),
                pl.BlockSpec((1, cp), lambda i: (0, 0)),
            ],
            out_specs=pl.BlockSpec((tile_m, cp), lambda i: (i, 0)),
        ),
        compiler_params=pltpu.CompilerParams(
            dimension_semantics=("parallel",)),    # independent tiles -> megacore on v7x
    )(conv_out, scale, shift)

    out = y[:M, :Cout].reshape(N, Ho, Wo, Cout)
    return jnp.transpose(out, (0, 3, 1, 2))        # back to NCHW


def downsample_ref(x_nchw, w_oihw, b, gamma, beta, *, matmul_dtype=jnp.float32):
    """Pure-JAX reference with PyTorch semantics (training-mode BN).

    matmul_dtype=jnp.bfloat16 reproduces the kernel's matmul-operand quantization
    (with f32 accumulation) for a tight apples-to-apples comparison."""
    y = jax.lax.conv_general_dilated(
        x_nchw.astype(matmul_dtype), w_oihw.astype(matmul_dtype),
        window_strides=(2, 2), padding=((1, 1), (1, 1)),
        dimension_numbers=('NCHW', 'OIHW', 'NCHW'),
        preferred_element_type=jnp.float32)
    y = y + b.reshape(1, -1, 1, 1).astype(jnp.float32)
    mean = jnp.mean(y, axis=(0, 2, 3), keepdims=True)
    var = jnp.mean((y - mean) ** 2, axis=(0, 2, 3), keepdims=True)   # biased variance
    y = (y - mean) * jax.lax.rsqrt(var + EPS)
    y = y * gamma.reshape(1, -1, 1, 1) + beta.reshape(1, -1, 1, 1)
    return jnp.maximum(y, 0.0)


if __name__ == "__main__":
    N, C, H, W = 2, 4, 16, 16

    key = jax.random.PRNGKey(0)
    kx, kw, kb = jax.random.split(key, 3)

    x = jax.random.normal(kx, (N, C, H, W), dtype=jnp.float32)
    # Deterministic synthetic parameter init (shapes from nn.Conv2d/BatchNorm2d).
    fan_in = C * 3 * 3
    bound = 1.0 / (fan_in ** 0.5)
    w_conv = jax.random.uniform(kw, (C, C, 3, 3), jnp.float32, -bound, bound)
    b_conv = jax.random.uniform(kb, (C,), jnp.float32, -bound, bound)
    gamma = jnp.ones((C,), jnp.float32)    # BatchNorm2d default affine weight
    beta = jnp.zeros((C,), jnp.float32)    # BatchNorm2d default affine bias

    out = downsample_pallas(x, w_conv, b_conv, gamma, beta)
    out = jax.block_until_ready(out)
    assert out.shape == (N, C, H // 2, W // 2), out.shape

    # Tight check vs a reference with identical bf16 matmul-operand quantization.
    ref_bf16 = downsample_ref(x, w_conv, b_conv, gamma, beta, matmul_dtype=jnp.bfloat16)
    err_bf16 = float(jnp.max(jnp.abs(out - ref_bf16)))
    assert jnp.allclose(out, ref_bf16, atol=2e-3, rtol=2e-3), err_bf16

    # Loose check vs the exact f32 PyTorch-semantics reference (bf16 operand rounding).
    ref_f32 = downsample_ref(x, w_conv, b_conv, gamma, beta, matmul_dtype=jnp.float32)
    err_f32 = float(jnp.max(jnp.abs(out - ref_f32)))
    assert jnp.allclose(out, ref_f32, atol=5e-2, rtol=5e-2), err_f32

    print("KERNEL_OK")
</pallas_src>

<mosaic_0001>
module attributes {stable_mosaic.version = 11 : i64} {
  func.func @conv_stats_kernel(%arg0: i32, %arg1: memref<128x36xbf16, #tpu.memory_space<vmem>>, %arg2: memref<36x128xbf16, #tpu.memory_space<vmem>>, %arg3: memref<1x128xf32, #tpu.memory_space<vmem>>, %arg4: memref<1x128xf32, #tpu.memory_space<vmem>>, %arg5: memref<128x128xf32, #tpu.memory_space<vmem>>, %arg6: memref<1x128xf32, #tpu.memory_space<vmem>>, %arg7: memref<1x128xf32, #tpu.memory_space<vmem>>, %arg8: memref<1x128xf32, #tpu.memory_space<vmem>>, %arg9: memref<1x128xf32, #tpu.memory_space<vmem>>) attributes {dimension_semantics = [#tpu.dimension_semantics<arbitrary>], iteration_bounds = array<i64: 1>, scalar_prefetch = 0 : i64, scratch_operands = 2 : i64, tpu.core_type = #tpu.core_type<tc>, window_params = [{transform_indices = @transform_0, window_bounds = array<i64: 128, 36>}, {pipeline_mode = #tpu.pipeline_mode<synchronous>, transform_indices = @transform_1, window_bounds = array<i64: 36, 128>}, {pipeline_mode = #tpu.pipeline_mode<synchronous>, transform_indices = @transform_2, window_bounds = array<i64: 1, 128>}, {pipeline_mode = #tpu.pipeline_mode<synchronous>, transform_indices = @transform_3, window_bounds = array<i64: 1, 128>}, {transform_indices = @transform_4, window_bounds = array<i64: 128, 128>}, {pipeline_mode = #tpu.pipeline_mode<synchronous>, transform_indices = @transform_5, window_bounds = array<i64: 1, 128>}, {pipeline_mode = #tpu.pipeline_mode<synchronous>, transform_indices = @transform_6, window_bounds = array<i64: 1, 128>}]} {
    %c0_i32 = arith.constant 0 : i32
    %0 = arith.cmpi eq, %arg0, %c0_i32 : i32
    %1 = arith.extui %0 : i1 to i32
    %c0_i32_0 = arith.constant 0 : i32
    %2 = arith.cmpi ne, %1, %c0_i32_0 : i32
    scf.if %2 {
      %cst_18 = arith.constant 0.000000e+00 : f32
      %21 = vector.broadcast %cst_18 : f32 to vector<1x128xf32>
      %c0_19 = arith.constant 0 : index
      %c0_20 = arith.constant 0 : index
      %22 = vector.load %arg8[%c0_19, %c0_20] : memref<1x128xf32, #tpu.memory_space<vmem>>, vector<1x128xf32>
      tpu.vector_store %arg8[%c0_19, %c0_20], %21 {strides = array<i32>} : memref<1x128xf32, #tpu.memory_space<vmem>>, vector<1x128xf32>,
      %cst_21 = arith.constant 0.000000e+00 : f32
      %23 = vector.broadcast %cst_21 : f32 to vector<1x128xf32>
      %c0_22 = arith.constant 0 : index
      %c0_23 = arith.constant 0 : index
      %24 = vector.load %arg9[%c0_22, %c0_23] : memref<1x128xf32, #tpu.memory_space<vmem>>, vector<1x128xf32>
      tpu.vector_store %arg9[%c0_22, %c0_23], %23 {strides = array<i32>} : memref<1x128xf32, #tpu.memory_space<vmem>>, vector<1x128xf32>,
    } else {
    }
    %c0 = arith.constant 0 : index
    %c0_1 = arith.constant 0 : index
    %3 = vector.load %arg1[%c0, %c0_1] : memref<128x36xbf16, #tpu.memory_space<vmem>>, vector<128x36xbf16>
    %c0_2 = arith.constant 0 : index
    %c0_3 = arith.constant 0 : index
    %4 = vector.load %arg2[%c0_2, %c0_3] : memref<36x128xbf16, #tpu.memory_space<vmem>>, vector<36x128xbf16>
    %cst = arith.constant dense<0.000000e+00> : vector<128x128xf32>
    %5 = tpu.matmul %3, %4, %cst {dimension_numbers = #tpu.dot_dimension_numbers<[1], [0], [0], [1], [0, 0, 1, 1], [], []>} : vector<128x36xbf16>, vector<36x128xbf16>, vector<128x128xf32> -> vector<128x128xf32>
    %c0_4 = arith.constant 0 : index
    %c0_5 = arith.constant 0 : index
    %6 = vector.load %arg5[%c0_4, %c0_5] : memref<128x128xf32, #tpu.memory_space<vmem>>, vector<128x128xf32>
    tpu.vector_store %arg5[%c0_4, %c0_5], %5 {strides = array<i32>} : memref<128x128xf32, #tpu.memory_space<vmem>>, vector<128x128xf32>,
    %c0_6 = arith.constant 0 : index
    %c0_7 = arith.constant 0 : index
    %7 = vector.load %arg8[%c0_6, %c0_7] : memref<1x128xf32, #tpu.memory_space<vmem>>, vector<1x128xf32>
    %cst_8 = arith.constant dense<0.000000e+00> : vector<128xf32>
    %8 = vector.multi_reduction <add>, %5, %cst_8 [0] : vector<128x128xf32> to vector<128xf32>
    %9 = vector.shape_cast %8 : vector<128xf32> to vector<1x128xf32>
    %10 = arith.addf %7, %9 : vector<1x128xf32>
    %c0_9 = arith.constant 0 : index
    %c0_10 = arith.constant 0 : index
    %11 = vector.load %arg8[%c0_9, %c0_10] : memref<1x128xf32, #tpu.memory_space<vmem>>, vector<1x128xf32>
    tpu.vector_store %arg8[%c0_9, %c0_10], %10 {strides = array<i32>} : memref<1x128xf32, #tpu.memory_space<vmem>>, vector<1x128xf32>,
    %c0_11 = arith.constant 0 : index
    %c0_12 = arith.constant 0 : index
    %12 = vector.load %arg9[%c0_11, %c0_12] : memref<1x128xf32, #tpu.memory_space<vmem>>, vector<1x128xf32>
    %13 = arith.mulf %5, %5 : vector<128x128xf32>
    %cst_13 = arith.constant dense<0.000000e+00> : vector<128xf32>
    %14 = vector.multi_reduction <add>, %13, %cst_13 [0] : vector<128x128xf32> to vector<128xf32>
    %15 = vector.shape_cast %14 : vector<128xf32> to vector<1x128xf32>
    %16 = arith.addf %12, %15 : vector<1x128xf32>
    %c0_14 = arith.constant 0 : index
    %c0_15 = arith.constant 0 : index
    %17 = vector.load %arg9[%c0_14, %c0_15] : memref<1x128xf32, #tpu.memory_space<vmem>>, vector<1x128xf32>
    tpu.vector_store %arg9[%c0_14, %c0_15], %16 {strides = array<i32>} : memref<1x128xf32, #tpu.memory_space<vmem>>, vector<1x128xf32>,
    %c0_i32_16 = arith.constant 0 : i32
    %18 = arith.cmpi eq, %arg0, %c0_i32_16 : i32
    %19 = arith.extui %18 : i1 to i32
    %c0_i32_17 = arith.constant 0 : i32
    %20 = arith.cmpi ne, %19, %c0_i32_17 : i32
    scf.if %20 {
      %c0_18 = arith.constant 0 : index
      %c0_19 = arith.constant 0 : index
      %21 = vector.load %arg8[%c0_18, %c0_19] : memref<1x128xf32, #tpu.memory_space<vmem>>, vector<1x128xf32>
      %cst_20 = arith.constant 7.812500e-03 : f32
      %22 = vector.broadcast %cst_20 : f32 to vector<1x128xf32>
      %23 = arith.mulf %21, %22 : vector<1x128xf32>
      %c0_21 = arith.constant 0 : index
      %c0_22 = arith.constant 0 : index
      %24 = vector.load %arg9[%c0_21, %c0_22] : memref<1x128xf32, #tpu.memory_space<vmem>>, vector<1x128xf32>
      %cst_23 = arith.constant 7.812500e-03 : f32
      %25 = vector.broadcast %cst_23 : f32 to vector<1x128xf32>
      %26 = arith.mulf %24, %25 : vector<1x128xf32>
      %27 = arith.mulf %23, %23 : vector<1x128xf32>
      %28 = arith.subf %26, %27 : vector<1x128xf32>
      %cst_24 = arith.constant 0.000000e+00 : f32
      %29 = vector.broadcast %cst_24 : f32 to vector<1x128xf32>
      %30 = arith.maximumf %28, %29 : vector<1x128xf32>
      %c0_25 = arith.constant 0 : index
      %c0_26 = arith.constant 0 : index
      %31 = vector.load %arg3[%c0_25, %c0_26] : memref<1x128xf32, #tpu.memory_space<vmem>>, vector<1x128xf32>
      %cst_27 = arith.constant 9.99999974E-6 : f32
      %32 = vector.broadcast %cst_27 : f32 to vector<1x128xf32>
      %33 = arith.addf %30, %32 : vector<1x128xf32>
      %34 = math.rsqrt %33 : vector<1x128xf32>
      %35 = arith.mulf %31, %34 : vector<1x128xf32>
      %c0_28 = arith.constant 0 : index
      %c0_29 = arith.constant 0 : index
      %36 = vector.load %arg6[%c0_28, %c0_29] : memref<1x128xf32, #tpu.memory_space<vmem>>, vector<1x128xf32>
      tpu.vector_store %arg6[%c0_28, %c0_29], %35 {strides = array<i32>} : memref<1x128xf32, #tpu.memory_space<vmem>>, vector<1x128xf32>,
      %c0_30 = arith.constant 0 : index
      %c0_31 = arith.constant 0 : index
      %37 = vector.load %arg4[%c0_30, %c0_31] : memref<1x128xf32, #tpu.memory_space<vmem>>, vector<1x128xf32>
      %38 = arith.mulf %23, %35 : vector<1x128xf32>
      %39 = arith.subf %37, %38 : vector<1x128xf32>
      %c0_32 = arith.constant 0 : index
      %c0_33 = arith.constant 0 : index
      %40 = vector.load %arg7[%c0_32, %c0_33] : memref<1x128xf32, #tpu.memory_space<vmem>>, vector<1x128xf32>
      tpu.vector_store %arg7[%c0_32, %c0_33], %39 {strides = array<i32>} : memref<1x128xf32, #tpu.memory_space<vmem>>, vector<1x128xf32>,
    } else {
    }
    return
  }
  func.func @transform_0(%arg0: i32) -> (i32, i32) {
    %c0_i32 = arith.constant 0 : i32
    %c0_i32_0 = arith.constant 0 : i32
    return %arg0, %c0_i32 : i32, i32
  }
  func.func @transform_1(%arg0: i32) -> (i32, i32) {
    %c0_i32 = arith.constant 0 : i32
    %c0_i32_0 = arith.constant 0 : i32
    %c0_i32_1 = arith.constant 0 : i32
    return %c0_i32, %c0_i32_0 : i32, i32
  }
  func.func @transform_2(%arg0: i32) -> (i32, i32) {
    %c0_i32 = arith.constant 0 : i32
    %c0_i32_0 = arith.constant 0 : i32
    %c0_i32_1 = arith.constant 0 : i32
    return %c0_i32, %c0_i32_0 : i32, i32
  }
  func.func @transform_3(%arg0: i32) -> (i32, i32) {
    %c0_i32 = arith.constant 0 : i32
    %c0_i32_0 = arith.constant 0 : i32
    %c0_i32_1 = arith.constant 0 : i32
    return %c0_i32, %c0_i32_0 : i32, i32
  }
  func.func @transform_4(%arg0: i32) -> (i32, i32) {
    %c0_i32 = arith.constant 0 : i32
    %c0_i32_0 = arith.constant 0 : i32
    return %arg0, %c0_i32 : i32, i32
  }
  func.func @transform_5(%arg0: i32) -> (i32, i32) {
    %c0_i32 = arith.constant 0 : i32
    %c0_i32_0 = arith.constant 0 : i32
    %c0_i32_1 = arith.constant 0 : i32
    return %c0_i32, %c0_i32_0 : i32, i32
  }
  func.func @transform_6(%arg0: i32) -> (i32, i32) {
    %c0_i32 = arith.constant 0 : i32
    %c0_i32_0 = arith.constant 0 : i32
    %c0_i32_1 = arith.constant 0 : i32
    return %c0_i32, %c0_i32_0 : i32, i32
  }
}

</mosaic_0001>

<bundles_post_ra>
// kernel: tpu_custom_call.1
= control target key start
LH: loop header
LB: loop body
LE: loop exit
PB: predicated region body
PF: predicated region fallthrough
CT: control target
= control target key end

     0   :  { %12 = vsyncpa [#allocation5], 0  ;;  %vm105_vm0 = vcmask 293888   ;;  %vm130_vm1 = vcmask 1041408   ;;  %s671_s0 = inlined_call_operand.vmem [shape: bf16[128,36], index: 0, kind: input, shape index: {}]   ;;  %s672_s1 = inlined_call_operand.vmem [shape: bf16[36,128], index: 1, kind: input, shape index: {}]   ;;  %s673_s2 = inlined_call_operand.vmem [shape: f32[1,128], index: 2, kind: input, shape index: {}]   ;;  %s674_s3 = inlined_call_operand.vmem [shape: f32[1,128], index: 3, kind: input, shape index: {}]   ;;  %s675_s4 = inlined_call_operand.hbm [shape: f32[128,128], index: 4, kind: output, shape index: {0}]   ;;  %s676_s5 = inlined_call_operand.hbm [shape: f32[1,128], index: 5, kind: output, shape index: {1}]   ;;  %s677_s6 = inlined_call_operand.hbm [shape: f32[1,128], index: 6, kind: output, shape index: {2}]  }
   0x1   :  { %v439_v0 = vld [vmem:[%s672_s1] sm:$0xff]   ;;  %v440_v1 = vld [vmem:[%s672_s1 + $0x8] sm:$0xff]   ;;  %v441_v2 = vld [vmem:[%s672_s1 + $0x10] ss:$0 sps:$4 sm:$0x33]  }
   0x2   :  { %403 = vmatprep.subr.bf16.mxu0 %v439_v0  ;;  %v442_v3 = vld [vmem:[%s671_s0] sm:$0xff]   ;;  %425 = vmatprep.subr.bf16.mxu1 %v439_v0  ;;  %v132_v5 = vsel %vm130_vm1, %v441_v2, 0  ;;  %v443_v6 = vld [vmem:[%s671_s0 + $0x8] sm:$0xff]  }
   0x3   :  { %404 = vmatpush3.bf16.msra.mxu0 %v439_v0  ;;  %428 = vmatpush3.bf16.msra.mxu1 %v439_v0  ;;  %v446_v4 = vld [vmem:[%s671_s0 + $0x20] sm:$0xff]   ;;  %v447_v7 = vld [vmem:[%s671_s0 + $0x28] sm:$0xff]  }
   0x4   :  { %405 = vmatprep.subr.bf16.mxu0 %v440_v1  ;;  %409 = vmatprep.mubr.msk.bf16.mxu0 %vm105_vm0, %v442_v3 }
   0x5   :  { %426 = vmatprep.subr.bf16.mxu1 %v440_v1  ;;  %417 = vmatprep.mubr.msk.bf16.mxu1 %vm105_vm0, %v446_v4 }
   0x7   :  { %406 = vmatpush3.bf16.msra.mxu0 %v440_v1  ;;  %429 = vmatpush3.bf16.msra.mxu1 %v440_v1 }
   0x8   :  { %431 = vmatprep.subr.msk.bf16.mxu0 %vm130_vm1, %v441_v2  ;;  %432 = vmatprep.subr.msk.bf16.mxu1 %vm130_vm1, %v441_v2 }
   0x9   :  { %13 = vsyncpa [#allocation7], 0  ;;  %v444_v8 = vld [vmem:[%s671_s0 + $0x10] sm:$0xff]   ;;  %v445_v10 = vld [vmem:[%s671_s0 + $0x18] sm:$0xff]   ;;  %v522_v12 = vmov 0.0  }
   0xa   :  { %v448_v9 = vld [vmem:[%s671_s0 + $0x30] sm:$0xff]   ;;  %v449_v11 = vld [vmem:[%s671_s0 + $0x38] sm:$0xff]   ;;  %27 = vst [vmem:[#allocation2] sm:$0x1] %v522_v12  ;;  %28 = vst [vmem:[#allocation3] sm:$0x1] %v522_v12 }
   0xb   :  { %408 = vmatpush3.bf16.msra.mxu0 %v132_v5  ;;  %430 = vmatpush3.bf16.msra.mxu1 %v132_v5  ;;  %s523_s0 = smov [#allocation4]  }
   0xc   :  { %s335_s18 = sshll.u32 %s523_s0, 4  ;;  %s613_s18 = int_to_ptr.vmem [resolvable:$true] %s335_s18 }
   0xd   :  { %s452_s19 = scalar_lea.vmem %s613_s18, 2048  ;;  %p457_p1 = scmp.lt.s32.totalorder %s613_s18, %s613_s18 }
   0xe   :  { %410 = vmatmul.mubr.msk.bf16.vlgmr.msra.gmra.mrb[0].mxu0 %vm105_vm0, %v443_v6  ;;  %418 = vmatmul.mubr.msk.bf16.vlgmr.msra.gmra.mrb[0].mxu1 %vm105_vm0, %v447_v7  ;;  %p453_p0 = scmp.ne.s32.totalorder %s613_s18, %s452_s19  ;;  %p458_p2 = scmp.lt.s32.totalorder %s452_s19, %s452_s19 }
   0xf   :  { %413 = vmatprep.mubr.msk.bf16.mxu0 %vm105_vm0, %v444_v8  ;;  %421 = vmatprep.mubr.msk.bf16.mxu1 %vm105_vm0, %v448_v9 }
  0x10   :  { %p459_p3 = por %p458_p2, %p457_p1 }
  0x12   :  { %p460_p4 = pnand %p459_p3, %p453_p0 }
  0x16   :  { %414 = vmatmul.mubr.msk.bf16.gmra.mrb[4].mxu0 %vm105_vm0, %v445_v10  ;;  %422 = vmatmul.mubr.msk.bf16.gmra.mrb[4].mxu1 %vm105_vm0, %v449_v11 }
  0xe1   :  { %v411_v13 = vpop.f32.mrb[0].mxu0  ;;  %v604_v14 = vpop.f32.mrb[0].mxu1 }
  0xe2   :  { %233 = vst [vmem:[#allocation4 + $0x10] sm:$0xff] %v411_v13  ;;  %v168_v15 = vpop.f32.mrb[1].mxu0  ;;  %241 = vst [vmem:[#allocation4 + $0x50] sm:$0xff] %v604_v14  ;;  %v607_v16 = vpop.f32.mrb[1].mxu1  ;;  %v274_v24 = vmul.f32 %v411_v13, %v411_v13 }
  0xe3   :  { %231 = vst [vmem:[#allocation4] sm:$0xff] %v168_v15  ;;  %v412_v17 = vpop.f32.mrb[2].mxu0  ;;  %239 = vst [vmem:[#allocation4 + $0x40] sm:$0xff] %v607_v16  ;;  %v610_v18 = vpop.f32.mrb[2].mxu1  ;;  %v272_v21 = vmul.f32 %v168_v15, %v168_v15 }
  0xe4   :  { %234 = vst [vmem:[#allocation4 + $0x18] sm:$0xff] %v412_v17  ;;  %v171_v19 = vpop.f32.mrb[3].mxu0  ;;  %242 = vst [vmem:[#allocation4 + $0x58] sm:$0xff] %v610_v18  ;;  %v203_v20 = vpop.f32.mrb[3].mxu1  ;;  %v275_v27 = vmul.f32 %v412_v17, %v412_v17 }
  0xe5   :  { %232 = vst [vmem:[#allocation4 + $0x8] sm:$0xff] %v171_v19  ;;  %v248_v22 = vadd.f32 %v171_v19, %v168_v15  ;;  %v273_v23 = vmul.f32 %v171_v19, %v171_v19  ;;  %240 = vst [vmem:[#allocation4 + $0x48] sm:$0xff] %v203_v20 }
  0xe7   :  { %v249_v25 = vadd.f32 %v411_v13, %v248_v22  ;;  %v288_v26 = vadd.f32 %v273_v23, %v272_v21 }
  0xe9   :  { %v289_v28 = vadd.f32 %v288_v26, %v274_v24  ;;  %v415_v29 = vpop.f32.mrb[4].mxu0  ;;  %v250_v30 = vadd.f32 %v412_v17, %v249_v25  ;;  %v423_v31 = vpop.f32.mrb[4].mxu1 }
  0xea   :  { %237 = vst [vmem:[#allocation4 + $0x30] sm:$0xff] %v415_v29  ;;  %v184_v32 = vpop.f32.mrb[5].mxu0  ;;  %245 = vst [vmem:[#allocation4 + $0x70] sm:$0xff] %v423_v31  ;;  %v216_v33 = vpop.f32.mrb[5].mxu1 }
  0xeb   :  { %235 = vst [vmem:[#allocation4 + $0x20] sm:$0xff] %v184_v32  ;;  %v251_v34 = vadd.f32 %v250_v30, %v184_v32  ;;  %v276_v35 = vmul.f32 %v184_v32, %v184_v32  ;;  %v290_v36 = vadd.f32 %v289_v28, %v275_v27  ;;  %v416_v37 = vpop.f32.mrb[6].mxu0  ;;  %243 = vst [vmem:[#allocation4 + $0x60] sm:$0xff] %v216_v33  ;;  %v424_v38 = vpop.f32.mrb[6].mxu1 }
  0xec   :  { %238 = vst [vmem:[#allocation4 + $0x38] sm:$0xff] %v416_v37  ;;  %v187_v39 = vpop.f32.mrb[7].mxu0  ;;  %246 = vst [vmem:[#allocation4 + $0x78] sm:$0xff] %v424_v38  ;;  %v219_v40 = vpop.f32.mrb[7].mxu1 }
  0xed   :  { %v291_v41 = vadd.f32 %v290_v36, %v276_v35  ;;  %236 = vst [vmem:[#allocation4 + $0x28] sm:$0xff] %v187_v39  ;;  %v252_v42 = vadd.f32 %v251_v34, %v187_v39  ;;  %v277_v43 = vmul.f32 %v187_v39, %v187_v39  ;;  %244 = vst [vmem:[#allocation4 + $0x68] sm:$0xff] %v219_v40 }
  0xee   :  { %463 = shalt.err (!%p460_p4)
}
  0xef   :  { %s464_s22 = scalar_lea.hbm %s675_s4, 2048 }
  0xf0   :  { %p465_p5 = scmp.ne.s32.totalorder %s675_s4, %s464_s22  ;;  %p468_p6 = scmp.lt.u32.totalorder %s464_s22, %s675_s4 }
  0xf2   :  { %p470_p7 = pnand %p468_p6, %p465_p5 }
  0xf4   :  { %473 = shalt.err (!%p470_p7)
}
  0xf5   :  { %s524_s27 = smov 128   ;;  %s525_s28 = smov 8   ;;  %v278_v44 = vmul.f32 %v415_v29, %v415_v29  ;;  %v253_v45 = vadd.f32 %v415_v29, %v252_v42  ;;  %v292_v46 = vadd.f32 %v291_v41, %v277_v43  ;;  %v279_v47 = vmul.f32 %v416_v37, %v416_v37  ;;  %v271_v23 = vld [vmem:[#allocation3] sm:$0x1]  ;;  %v321_v35 = vld [vmem:[%s673_s2] sm:$0x1] }
  0xf6   :  { %341 = dma.vmem_to_hbm [thread:$0]  %s613_s18, 2048, %s675_s4, [#allocation5], %s524_s27, %s524_s27, %s525_s28   ;;  %v280_v50 = vmul.f32 %v607_v16, %v607_v16  ;;  %v281_v55 = vmul.f32 %v203_v20, %v203_v20  ;;  %v282_v56 = vmul.f32 %v604_v14, %v604_v14  ;;  %v283_v59 = vmul.f32 %v610_v18, %v610_v18 }
  0xf7   :  { %v293_v48 = vadd.f32 %v292_v46, %v278_v44  ;;  %v254_v49 = vadd.f32 %v416_v37, %v253_v45  ;;  %v284_v62 = vmul.f32 %v216_v33, %v216_v33  ;;  %v285_v3 = vmul.f32 %v219_v40, %v219_v40  ;;  %s526_s7 = smov [#allocation6]   ;;  %s527_s11 = smov [#allocation8]  }
  0xf8   :  { %v286_v4 = vmul.f32 %v423_v31, %v423_v31  ;;  %v287_v7 = vmul.f32 %v424_v38, %v424_v38  ;;  %s348_s8 = sshll.u32 %s526_s7, 4  ;;  %s358_s12 = sshll.u32 %s527_s11, 4  ;;  %s349_s8 = int_to_ptr.vmem [resolvable:$true] %s348_s8  ;;  %s359_s12 = int_to_ptr.vmem [resolvable:$true] %s358_s12 }
  0xf9   :  { %v255_v51 = vadd.f32 %v254_v49, %v607_v16  ;;  %v294_v52 = vadd.f32 %v293_v48, %v279_v47  ;;  %s474_s13 = scalar_lea.vmem %s349_s8, 16  ;;  %s478_s14 = scalar_lea.vmem %s349_s8, 32 }
  0xfa   :  { %p475_p8 = scmp.ne.s32.totalorder %s349_s8, %s474_s13  ;;  %p479_p9 = scmp.lt.s32.totalorder %s349_s8, %s349_s8 }
  0xfb   :  { %v295_v53 = vadd.f32 %v294_v52, %v280_v50  ;;  %v256_v54 = vadd.f32 %v255_v51, %v203_v20  ;;  %v247_v20 = vld [vmem:[#allocation2] sm:$0x1]  ;;  %p480_p10 = scmp.lt.s32.totalorder %s478_s14, %s474_s13 }
  0xfd   :  { %v257_v57 = vadd.f32 %v604_v14, %v256_v54  ;;  %v296_v58 = vadd.f32 %v295_v53, %v281_v55  ;;  %p481_p11 = por %p480_p10, %p479_p9 }
  0xff   :  { %v297_v60 = vadd.f32 %v296_v58, %v282_v56  ;;  %v258_v61 = vadd.f32 %v610_v18, %v257_v57  ;;  %p482_p12 = pnand %p481_p11, %p475_p8 }
 0x101   :  { %v259_v63 = vadd.f32 %v258_v61, %v216_v33  ;;  %v298_v0 = vadd.f32 %v297_v60, %v283_v59 }
 0x103   :  { %v299_v1 = vadd.f32 %v298_v0, %v284_v62  ;;  %v260_v2 = vadd.f32 %v259_v63, %v219_v40 }
 0x105   :  { %v261_v5 = vadd.f32 %v423_v31, %v260_v2  ;;  %v300_v6 = vadd.f32 %v299_v1, %v285_v3 }
 0x107   :  { %v262_v8 = vadd.f32 %v424_v38, %v261_v5  ;;  %v301_v9 = vadd.f32 %v300_v6, %v286_v4  ;;  %v326_v38 = vld [vmem:[%s674_s3] sm:$0x1] }
 0x109   :  { %v263_v10 = vrot.slane %v262_v8, 4  ;;  %v302_v11 = vadd.f32 %v301_v9, %v287_v7 }
 0x10b   :  { %v264_v12 = vadd.f32 %v263_v10, %v262_v8  ;;  %v303_v13 = vrot.slane %v302_v11, 4 }
 0x10d   :  { %v265_v14 = vrot.slane %v264_v12, 2  ;;  %v304_v15 = vadd.f32 %v303_v13, %v302_v11 }
 0x10f   :  { %v266_v16 = vadd.f32 %v265_v14, %v264_v12  ;;  %v305_v17 = vrot.slane %v304_v15, 2 }
 0x111   :  { %v267_v18 = vrot.slane %v266_v16, 1  ;;  %v306_v19 = vadd.f32 %v305_v17, %v304_v15 }
 0x113   :  { %v268_v21 = vadd.f32 %v267_v18, %v266_v16  ;;  %v307_v22 = vrot.slane %v306_v19, 1 }
 0x115   :  { %v269_v24 = vadd.f32 %v268_v21, %v247_v20  ;;  %v308_v25 = vadd.f32 %v307_v22, %v306_v19 }
 0x117   :  { %270 = vst [vmem:[#allocation2] sm:$0x1] %v269_v24  ;;  %v309_v26 = vadd.f32 %v308_v25, %v271_v23 }
 0x119   :  { %310 = vst [vmem:[#allocation3] sm:$0x1] %v309_v26 }
 0x11e   :  { %v314_v27 = vld [vmem:[#allocation2] sm:$0x1] }
 0x11f   :  { %v315_v28 = vmul.f32 0.0078125, %v314_v27 }
 0x120   :  { %v316_v29 = vld [vmem:[#allocation3] sm:$0x1] }
 0x121   :  { %v317_v30 = vmul.f32 0.0078125, %v316_v29  ;;  %v318_v31 = vmul.f32 %v315_v28, %v315_v28 }
 0x123   :  { %v319_v32 = vsub.f32 %v317_v30, %v318_v31 }
 0x125   :  { %v320_v33 = vmax.f32 %v319_v32, 0.0 }
 0x127   :  { %v322_v34 = vadd.f32 1e-05, %v320_v33 }
 0x129   :  { %450 = vrsqrt.f32 %v322_v34 }
 0x133   :  { %v451_v36 = vpop.eup %450 }
 0x134   :  { %v324_v37 = vmul.f32 %v451_v36, %v321_v35 }
 0x136   :  { %325 = vst [vmem:[#allocation6] sm:$0x1] %v324_v37  ;;  %v327_v39 = vmul.f32 %v324_v37, %v315_v28 }
 0x137   :  { %485 = shalt.err (!%p482_p12)
}
 0x138   :  { %s486_s16 = scalar_lea.hbm %s676_s5, 16 }
 0x139   :  { %p487_p13 = scmp.ne.s32.totalorder %s676_s5, %s486_s16  ;;  %p490_p0 = scmp.lt.u32.totalorder %s486_s16, %s676_s5 }
 0x13b   :  { %p492_p1 = pnand %p490_p0, %p487_p13 }
 0x13d   :  { %495 = shalt.err (!%p492_p1)
}
 0x13e   :  { %351 = dma.vmem_to_hbm [thread:$0]  %s349_s8, 16, %s676_s5, [#allocation7]   ;;  %v328_v40 = vsub.f32 %v326_v38, %v327_v39 }
 0x13f   :  { %s496_s21 = scalar_lea.vmem %s359_s12, 16  ;;  %s500_s22 = scalar_lea.vmem %s359_s12, 32 }
 0x140   :  { %329 = vst [vmem:[#allocation8] sm:$0x1] %v328_v40  ;;  %p497_p2 = scmp.ne.s32.totalorder %s359_s12, %s496_s21  ;;  %p501_p3 = scmp.lt.s32.totalorder %s359_s12, %s359_s12 }
 0x141   :  { %p502_p4 = scmp.lt.s32.totalorder %s500_s22, %s496_s21 }
 0x143   :  { %p503_p5 = por %p502_p4, %p501_p3 }
 0x145   :  { %p504_p6 = pnand %p503_p5, %p497_p2 }
 0x147   :  { %507 = shalt.err (!%p504_p6)
}
 0x148   :  { %s508_s25 = scalar_lea.hbm %s677_s6, 16 }
 0x149   :  { %p509_p7 = scmp.ne.s32.totalorder %s677_s6, %s508_s25  ;;  %p512_p8 = scmp.lt.u32.totalorder %s508_s25, %s677_s6 }
 0x14b   :  { %p514_p9 = pnand %p512_p8, %p509_p7 }
 0x14d   :  { %517 = shalt.err (!%p514_p9)
}
 0x14e   :  { %361 = dma.vmem_to_hbm [thread:$0]  %s359_s12, 16, %s677_s6, [#allocation7]  }
 0x14f   :  { %518 = dma.done.wait [#allocation5], 2048  }
 0x150   :  { %519 = vsyncadd [#allocation5], 4294965248 }
 0x151   :  { %520 = dma.done.wait [#allocation7], 32  }
 0x152   :  { %521 = vsyncadd [#allocation7], 4294967264 }
 0x153   :  { %371 = vsyncpa [#allocation5], 1 }
 0x154   :  { %372 = vsyncpa [#allocation7], 1 }

</bundles_post_ra>
